<compile_context>
chip_gen: v5e
topology: v5e:2x2
jax: 0.10.0
libtpu: 0.0.40
codegen_flags: <defaults>
</compile_context>

<pallas_src>
import functools
import math

import jax
import jax.numpy as jnp
from jax import lax
from jax.experimental import pallas as pl
from jax.experimental.pallas import tpu as pltpu

EPS = 1e-5
_MAX_TILE = 65536
_VMEM_CAP = None


def _cdiv(a, b):
    return -(-a // b)


def _round_up(x, m):
    return _cdiv(x, m) * m


def _vmem_capacity_bytes():
    global _VMEM_CAP
    if _VMEM_CAP is None:
        try:
            _VMEM_CAP = int(pltpu.get_tpu_info().vmem_capacity_bytes)
        except Exception:
            _VMEM_CAP = 64 * 1024 * 1024   # conservative: v7x per-TC VMEM
    return _VMEM_CAP


def _choose_tile(C, S, logs_itemsize, max_tile):
    """Spatial (lane) tile, sized by bytes per block against a VMEM budget."""
    budget = min(_vmem_capacity_bytes() // 3, 40 * 1024 * 1024)
    # Per spatial lane: double-buffered inputs (C*itemsize logits + 4B labels)
    # plus ~4 f32 (C,) compute intermediates (one-hot, exp, pred, products).
    per_lane = 2 * (C * logs_itemsize + 4) + 4 * C * 4
    cap = max(128, (budget // per_lane) // 128 * 128)
    cap = min(cap, _MAX_TILE)
    if max_tile is not None:
        cap = min(cap, max(128, (max_tile // 128) * 128))
    return min(cap, _round_up(S, 128))


def _dice_sums_kernel(logs_ref, lbl_ref, tp_ref, yv_ref, pv_ref, *,
                      tile, n_s_inner, s_valid, ragged):
    p = pl.program_id(0)
    s = pl.program_id(2)

    # Zero the per-(split, batch) accumulators at the start of each reduction.
    @pl.when(s == 0)
    def _():
        tp_ref[...] = jnp.zeros_like(tp_ref)
        yv_ref[...] = jnp.zeros_like(yv_ref)
        pv_ref[...] = jnp.zeros_like(pv_ref)

    logs = logs_ref[...].astype(jnp.float32)              # (C, tile)
    lbl = lbl_ref[...]                                     # (1, tile) int32

    # Rebuild the one-hot labels in-kernel (saves the (C, tile) label stream).
    chan = lax.broadcasted_iota(jnp.int32, logs.shape, 0)
    yb = (chan == lbl).astype(jnp.float32)                 # (C, tile)

    # Numerically stable softmax over the channel (sublane) axis.
    # TODO(synk): at very small C most EUP exp work is sublane padding; if the
    # bundle dump shows the EUP as the binding slot on v7x, pack two spatial
    # half-tiles into the 8 sublanes instead.
    m = jnp.max(logs, axis=0, keepdims=True)               # (1, tile)
    e = jnp.exp(logs - m)                                   # (C, tile)
    denom = jnp.sum(e, axis=0, keepdims=True)               # (1, tile), >= 1
    pred = e / denom                                         # exact reciprocal

    def accum(pred_v, yb_v):
        tp_ref[...] += jnp.sum(yb_v * pred_v, axis=-1, keepdims=True)
        yv_ref[...] += jnp.sum(yb_v, axis=-1, keepdims=True)
        pv_ref[...] += jnp.sum(pred_v, axis=-1, keepdims=True)

    if ragged:
        blk = p * n_s_inner + s                  # global spatial block index
        is_edge = (blk + 1) * tile > s_valid

        @pl.when(jnp.logical_not(is_edge))
        def _():
            accum(pred, yb)

        @pl.when(is_edge)
        def _():
            # Ragged (or fully out-of-range) block: contents past S are
            # unspecified, so mask both pred and the rebuilt one-hot.
            lane = lax.broadcasted_iota(jnp.int32, pred.shape, 1)
            valid = (blk * tile + lane) < s_valid
            accum(jnp.where(valid, pred, 0.0), jnp.where(valid, yb, 0.0))
    else:
        accum(pred, yb)


def _dice_sums(logs_r, labels_r, max_tile):
    """logs_r: (N, C, S) native dtype; labels_r: (N, 1, S) int32."""
    N, C, S = logs_r.shape
    tile = _choose_tile(C, S, logs_r.dtype.itemsize, max_tile)
    n_s_total = _cdiv(S, tile)
    # Size-2 split of the spatial axis so both v7x TensorCores get work even
    # when N == 1 (partial accumulators summed in the wrapper).
    n_split = 2 if n_s_total >= 2 else 1
    n_s_inner = _cdiv(n_s_total, n_split)
    ragged = (n_split * n_s_inner * tile) != S

    def in_idx(pth, b, st):
        # Clamp so overhang blocks of the split re-read an in-bounds block;
        # their contribution is fully masked in-kernel.
        blk = jnp.minimum(pth * n_s_inner + st, n_s_total - 1)
        return (b, 0, blk)

    kernel = functools.partial(
        _dice_sums_kernel, tile=tile, n_s_inner=n_s_inner, s_valid=S,
        ragged=ragged)

    out_shape = jax.ShapeDtypeStruct((n_split, N, C, 1), jnp.float32)
    out_spec = pl.BlockSpec((None, None, C, 1),
                            lambda pth, b, st: (pth, b, 0, 0))

    vmem_limit = min(int(_vmem_capacity_bytes() * 3 // 4), 100 * 1024 * 1024)

    tp, yv, pv = pl.pallas_call(
        kernel,
        out_shape=(out_shape, out_shape, out_shape),
        grid_spec=pltpu.PrefetchScalarGridSpec(
            num_scalar_prefetch=0,
            grid=(n_split, N, n_s_inner),
            in_specs=[
                pl.BlockSpec((None, C, tile), in_idx),
                pl.BlockSpec((None, 1, tile), in_idx),
            ],
            out_specs=[out_spec, out_spec, out_spec],
        ),
        compiler_params=pltpu.CompilerParams(
            dimension_semantics=("parallel", "parallel", "arbitrary"),
            vmem_limit_bytes=vmem_limit,
        ),
    )(logs_r, labels_r)
    return tp, yv, pv


def _finalize(tp, yv, pv):
    tp = jnp.sum(tp, axis=0)[:, 1:, 0]      # drop background channel here
    yv = jnp.sum(yv, axis=0)[:, 1:, 0]
    pv = jnp.sum(pv, axis=0)[:, 1:, 0]
    dice = (tp + EPS) / (0.5 * yv + 0.5 * pv + EPS)
    return 1.0 - jnp.mean(dice)


@functools.partial(jax.jit, static_argnames=("max_tile",))
def dice_loss_from_labels(logs, labels, *, max_tile=None):
    """Efficient entry point: integer class labels of shape (N, *spatial)."""
    N, C = logs.shape[:2]
    S = math.prod(logs.shape[2:])
    logs_r = logs.reshape(N, C, S)                     # native dtype, no upcast
    labels_r = labels.reshape(N, 1, S).astype(jnp.int32)
    tp, yv, pv = _dice_sums(logs_r, labels_r, max_tile)
    return _finalize(tp, yv, pv)


@functools.partial(jax.jit, static_argnames=("max_tile",))
def dice_loss(logs, yb_oh, mask=None, *, max_tile=None):
    """Matches the PyTorch module: one-hot labels with the same shape as logs."""
    # TODO(synk): the optional `mask` argument of the PyTorch forward is not
    # implemented (mask=None path only).
    if mask is not None:
        raise NotImplementedError("mask is not supported by this Pallas kernel")
    assert logs.shape == yb_oh.shape
    N, C = logs.shape[:2]
    S = math.prod(logs.shape[2:])
    logs_r = logs.reshape(N, C, S)
    # Collapse the one-hot to integer labels (single XLA pass); the kernel
    # rebuilds the one-hot in VMEM, so its HBM label stream is S ints, not C*S.
    labels_r = jnp.argmax(yb_oh.reshape(N, C, S), axis=1).astype(jnp.int32)
    labels_r = labels_r.reshape(N, 1, S)
    tp, yv, pv = _dice_sums(logs_r, labels_r, max_tile)
    return _finalize(tp, yv, pv)


def _dice_loss_ref(logs, yb_oh):
    """Pure-JAX reference matching the PyTorch module (mask=None)."""
    pred = jax.nn.softmax(logs.astype(jnp.float32), axis=1)
    pred = pred[:, 1:]
    yb = yb_oh.astype(jnp.float32)[:, 1:]
    dims = tuple(range(2, logs.ndim))
    tp = jnp.sum(yb * pred, axis=dims)
    yv = jnp.sum(yb, axis=dims)
    pv = jnp.sum(pred, axis=dims)
    dice = (tp + EPS) / (0.5 * yv + 0.5 * pv + EPS)
    return 1.0 - dice.mean()


def _check(key, N, C, H, W, dtype=jnp.float32, max_tile=None):
    k1, k2 = jax.random.split(key)
    logs = jax.random.normal(k1, (N, C, H, W), dtype=jnp.float32).astype(dtype)
    labels = jax.random.randint(k2, (N, H, W), 0, C)
    yb_oh = jax.nn.one_hot(labels, C, axis=1, dtype=jnp.float32)  # (N, C, H, W)

    loss = jax.block_until_ready(dice_loss(logs, yb_oh, max_tile=max_tile))
    ref = jax.block_until_ready(_dice_loss_ref(logs, yb_oh))
    assert jnp.allclose(loss, ref, atol=1e-5, rtol=1e-5), (loss, ref, (N, C, H, W))

    # Also exercise the integer-label entry point.
    loss2 = jax.block_until_ready(
        dice_loss_from_labels(logs, labels, max_tile=max_tile))
    assert jnp.allclose(loss2, ref, atol=1e-5, rtol=1e-5), (loss2, ref, (N, C, H, W))


if __name__ == "__main__":
    key = jax.random.PRNGKey(0)
    k1, k2, k3 = jax.random.split(key, 3)

    # Exact-tile path (S a multiple of 128, single spatial block).
    _check(k1, N=2, C=4, H=16, W=16)
    # Ragged single-block path (S not a multiple of 128).
    _check(k2, N=2, C=3, H=18, W=18)
    # Multi-block + size-2 split + clamped overhang block + ragged edge + bf16
    # logits (max_tile forces several small spatial tiles at a small shape).
    _check(k3, N=1, C=5, H=16, W=20, dtype=jnp.bfloat16, max_tile=128)

    print("KERNEL_OK")
</pallas_src>

<mosaic_0001>
module attributes {stable_mosaic.version = 11 : i64} {
  func.func @_dice_sums_kernel(%arg0: i32, %arg1: i32, %arg2: i32, %arg3: memref<1x4x256xf32, #tpu.memory_space<vmem>>, %arg4: memref<1x1x256xi32, #tpu.memory_space<vmem>>, %arg5: memref<1x1x4x1xf32, #tpu.memory_space<vmem>>, %arg6: memref<1x1x4x1xf32, #tpu.memory_space<vmem>>, %arg7: memref<1x1x4x1xf32, #tpu.memory_space<vmem>>) attributes {dimension_semantics = [#tpu.dimension_semantics<parallel>, #tpu.dimension_semantics<parallel>, #tpu.dimension_semantics<arbitrary>], iteration_bounds = array<i64: 1, 2, 1>, scalar_prefetch = 0 : i64, scratch_operands = 0 : i64, tpu.core_type = #tpu.core_type<tc>, window_params = [{transform_indices = @transform_0, window_bounds = array<i64: 1, 4, 256>}, {transform_indices = @transform_1, window_bounds = array<i64: 1, 1, 256>}, {transform_indices = @transform_2, window_bounds = array<i64: 1, 1, 4, 1>}, {transform_indices = @transform_3, window_bounds = array<i64: 1, 1, 4, 1>}, {transform_indices = @transform_4, window_bounds = array<i64: 1, 1, 4, 1>}]} {
    %c0_i32 = arith.constant 0 : i32
    %0 = arith.cmpi eq, %arg2, %c0_i32 : i32
    %1 = arith.extui %0 : i1 to i32
    %c0_i32_0 = arith.constant 0 : i32
    %2 = arith.cmpi ne, %1, %c0_i32_0 : i32
    scf.if %2 {
      %cst_34 = arith.constant 0.000000e+00 : f32
      %46 = vector.broadcast %cst_34 : f32 to vector<4x1xf32>
      %c0_35 = arith.constant 0 : index
      %c0_36 = arith.constant 0 : index
      %c0_37 = arith.constant 0 : index
      %c0_38 = arith.constant 0 : index
      %47 = vector.load %arg5[%c0_35, %c0_36, %c0_37, %c0_38] : memref<1x1x4x1xf32, #tpu.memory_space<vmem>>, vector<1x1x4x1xf32>
      %48 = vector.shape_cast %47 : vector<1x1x4x1xf32> to vector<4x1xf32>
      %49 = vector.shape_cast %46 : vector<4x1xf32> to vector<1x1x4x1xf32>
      tpu.vector_store %arg5[%c0_35, %c0_36, %c0_37, %c0_38], %49 {strides = array<i32>} : memref<1x1x4x1xf32, #tpu.memory_space<vmem>>, vector<1x1x4x1xf32>,
      %cst_39 = arith.constant 0.000000e+00 : f32
      %50 = vector.broadcast %cst_39 : f32 to vector<4x1xf32>
      %c0_40 = arith.constant 0 : index
      %c0_41 = arith.constant 0 : index
      %c0_42 = arith.constant 0 : index
      %c0_43 = arith.constant 0 : index
      %51 = vector.load %arg6[%c0_40, %c0_41, %c0_42, %c0_43] : memref<1x1x4x1xf32, #tpu.memory_space<vmem>>, vector<1x1x4x1xf32>
      %52 = vector.shape_cast %51 : vector<1x1x4x1xf32> to vector<4x1xf32>
      %53 = vector.shape_cast %50 : vector<4x1xf32> to vector<1x1x4x1xf32>
      tpu.vector_store %arg6[%c0_40, %c0_41, %c0_42, %c0_43], %53 {strides = array<i32>} : memref<1x1x4x1xf32, #tpu.memory_space<vmem>>, vector<1x1x4x1xf32>,
      %cst_44 = arith.constant 0.000000e+00 : f32
      %54 = vector.broadcast %cst_44 : f32 to vector<4x1xf32>
      %c0_45 = arith.constant 0 : index
      %c0_46 = arith.constant 0 : index
      %c0_47 = arith.constant 0 : index
      %c0_48 = arith.constant 0 : index
      %55 = vector.load %arg7[%c0_45, %c0_46, %c0_47, %c0_48] : memref<1x1x4x1xf32, #tpu.memory_space<vmem>>, vector<1x1x4x1xf32>
      %56 = vector.shape_cast %55 : vector<1x1x4x1xf32> to vector<4x1xf32>
      %57 = vector.shape_cast %54 : vector<4x1xf32> to vector<1x1x4x1xf32>
      tpu.vector_store %arg7[%c0_45, %c0_46, %c0_47, %c0_48], %57 {strides = array<i32>} : memref<1x1x4x1xf32, #tpu.memory_space<vmem>>, vector<1x1x4x1xf32>,
    } else {
    }
    %c0 = arith.constant 0 : index
    %c0_1 = arith.constant 0 : index
    %c0_2 = arith.constant 0 : index
    %3 = vector.load %arg3[%c0, %c0_1, %c0_2] : memref<1x4x256xf32, #tpu.memory_space<vmem>>, vector<1x4x256xf32>
    %4 = vector.shape_cast %3 : vector<1x4x256xf32> to vector<4x256xf32>
    %c0_3 = arith.constant 0 : index
    %c0_4 = arith.constant 0 : index
    %c0_5 = arith.constant 0 : index
    %5 = vector.load %arg4[%c0_3, %c0_4, %c0_5] : memref<1x1x256xi32, #tpu.memory_space<vmem>>, vector<1x1x256xi32>
    %6 = vector.shape_cast %5 : vector<1x1x256xi32> to vector<1x256xi32>
    %7 = tpu.iota {dimensions = array<i32: 0>} : vector<4x256xi32>
    %8 = vector.broadcast %6 : vector<1x256xi32> to vector<4x256xi32>
    %9 = arith.cmpi eq, %7, %8 : vector<4x256xi32>
    %10 = arith.extui %9 : vector<4x256xi1> to vector<4x256xi32>
    %11 = arith.sitofp %10 : vector<4x256xi32> to vector<4x256xf32>
    %cst = arith.constant dense<0xFF800000> : vector<256xf32>
    %12 = vector.multi_reduction <maximumf>, %4, %cst [0] : vector<4x256xf32> to vector<256xf32>
    %13 = vector.shape_cast %12 : vector<256xf32> to vector<1x256xf32>
    %14 = vector.broadcast %13 : vector<1x256xf32> to vector<4x256xf32>
    %15 = arith.subf %4, %14 : vector<4x256xf32>
    %16 = math.exp %15 : vector<4x256xf32>
    %cst_6 = arith.constant dense<0.000000e+00> : vector<256xf32>
    %17 = vector.multi_reduction <add>, %16, %cst_6 [0] : vector<4x256xf32> to vector<256xf32>
    %18 = vector.shape_cast %17 : vector<256xf32> to vector<1x256xf32>
    %19 = vector.broadcast %18 : vector<1x256xf32> to vector<4x256xf32>
    %20 = arith.divf %16, %19 : vector<4x256xf32>
    %c0_7 = arith.constant 0 : index
    %c0_8 = arith.constant 0 : index
    %c0_9 = arith.constant 0 : index
    %c0_10 = arith.constant 0 : index
    %21 = vector.load %arg5[%c0_7, %c0_8, %c0_9, %c0_10] : memref<1x1x4x1xf32, #tpu.memory_space<vmem>>, vector<1x1x4x1xf32>
    %22 = vector.shape_cast %21 : vector<1x1x4x1xf32> to vector<4x1xf32>
    %23 = arith.mulf %11, %20 : vector<4x256xf32>
    %cst_11 = arith.constant dense<0.000000e+00> : vector<4xf32>
    %24 = vector.multi_reduction <add>, %23, %cst_11 [1] : vector<4x256xf32> to vector<4xf32>
    %25 = vector.shape_cast %24 : vector<4xf32> to vector<4x1xf32>
    %26 = arith.addf %22, %25 : vector<4x1xf32>
    %c0_12 = arith.constant 0 : index
    %c0_13 = arith.constant 0 : index
    %c0_14 = arith.constant 0 : index
    %c0_15 = arith.constant 0 : index
    %27 = vector.load %arg5[%c0_12, %c0_13, %c0_14, %c0_15] : memref<1x1x4x1xf32, #tpu.memory_space<vmem>>, vector<1x1x4x1xf32>
    %28 = vector.shape_cast %27 : vector<1x1x4x1xf32> to vector<4x1xf32>
    %29 = vector.shape_cast %26 : vector<4x1xf32> to vector<1x1x4x1xf32>
    tpu.vector_store %arg5[%c0_12, %c0_13, %c0_14, %c0_15], %29 {strides = array<i32>} : memref<1x1x4x1xf32, #tpu.memory_space<vmem>>, vector<1x1x4x1xf32>,
    %c0_16 = arith.constant 0 : index
    %c0_17 = arith.constant 0 : index
    %c0_18 = arith.constant 0 : index
    %c0_19 = arith.constant 0 : index
    %30 = vector.load %arg6[%c0_16, %c0_17, %c0_18, %c0_19] : memref<1x1x4x1xf32, #tpu.memory_space<vmem>>, vector<1x1x4x1xf32>
    %31 = vector.shape_cast %30 : vector<1x1x4x1xf32> to vector<4x1xf32>
    %cst_20 = arith.constant dense<0.000000e+00> : vector<4xf32>
    %32 = vector.multi_reduction <add>, %11, %cst_20 [1] : vector<4x256xf32> to vector<4xf32>
    %33 = vector.shape_cast %32 : vector<4xf32> to vector<4x1xf32>
    %34 = arith.addf %31, %33 : vector<4x1xf32>
    %c0_21 = arith.constant 0 : index
    %c0_22 = arith.constant 0 : index
    %c0_23 = arith.constant 0 : index
    %c0_24 = arith.constant 0 : index
    %35 = vector.load %arg6[%c0_21, %c0_22, %c0_23, %c0_24] : memref<1x1x4x1xf32, #tpu.memory_space<vmem>>, vector<1x1x4x1xf32>
    %36 = vector.shape_cast %35 : vector<1x1x4x1xf32> to vector<4x1xf32>
    %37 = vector.shape_cast %34 : vector<4x1xf32> to vector<1x1x4x1xf32>
    tpu.vector_store %arg6[%c0_21, %c0_22, %c0_23, %c0_24], %37 {strides = array<i32>} : memref<1x1x4x1xf32, #tpu.memory_space<vmem>>, vector<1x1x4x1xf32>,
    %c0_25 = arith.constant 0 : index
    %c0_26 = arith.constant 0 : index
    %c0_27 = arith.constant 0 : index
    %c0_28 = arith.constant 0 : index
    %38 = vector.load %arg7[%c0_25, %c0_26, %c0_27, %c0_28] : memref<1x1x4x1xf32, #tpu.memory_space<vmem>>, vector<1x1x4x1xf32>
    %39 = vector.shape_cast %38 : vector<1x1x4x1xf32> to vector<4x1xf32>
    %cst_29 = arith.constant dense<0.000000e+00> : vector<4xf32>
    %40 = vector.multi_reduction <add>, %20, %cst_29 [1] : vector<4x256xf32> to vector<4xf32>
    %41 = vector.shape_cast %40 : vector<4xf32> to vector<4x1xf32>
    %42 = arith.addf %39, %41 : vector<4x1xf32>
    %c0_30 = arith.constant 0 : index
    %c0_31 = arith.constant 0 : index
    %c0_32 = arith.constant 0 : index
    %c0_33 = arith.constant 0 : index
    %43 = vector.load %arg7[%c0_30, %c0_31, %c0_32, %c0_33] : memref<1x1x4x1xf32, #tpu.memory_space<vmem>>, vector<1x1x4x1xf32>
    %44 = vector.shape_cast %43 : vector<1x1x4x1xf32> to vector<4x1xf32>
    %45 = vector.shape_cast %42 : vector<4x1xf32> to vector<1x1x4x1xf32>
    tpu.vector_store %arg7[%c0_30, %c0_31, %c0_32, %c0_33], %45 {strides = array<i32>} : memref<1x1x4x1xf32, #tpu.memory_space<vmem>>, vector<1x1x4x1xf32>,
    return
  }
  func.func @transform_0(%arg0: i32, %arg1: i32, %arg2: i32) -> (i32, i32, i32) {
    %c1_i32 = arith.constant 1 : i32
    %0 = arith.muli %arg0, %c1_i32 : i32
    %1 = arith.addi %0, %arg2 : i32
    %c0_i32 = arith.constant 0 : i32
    %2 = arith.minsi %1, %c0_i32 : i32
    %c0_i32_0 = arith.constant 0 : i32
    %c0_i32_1 = arith.constant 0 : i32
    return %arg1, %c0_i32_0, %2 : i32, i32, i32
  }
  func.func @transform_1(%arg0: i32, %arg1: i32, %arg2: i32) -> (i32, i32, i32) {
    %c1_i32 = arith.constant 1 : i32
    %0 = arith.muli %arg0, %c1_i32 : i32
    %1 = arith.addi %0, %arg2 : i32
    %c0_i32 = arith.constant 0 : i32
    %2 = arith.minsi %1, %c0_i32 : i32
    %c0_i32_0 = arith.constant 0 : i32
    %c0_i32_1 = arith.constant 0 : i32
    return %arg1, %c0_i32_0, %2 : i32, i32, i32
  }
  func.func @transform_2(%arg0: i32, %arg1: i32, %arg2: i32) -> (i32, i32, i32, i32) {
    %c0_i32 = arith.constant 0 : i32
    %c0_i32_0 = arith.constant 0 : i32
    %c0_i32_1 = arith.constant 0 : i32
    return %arg0, %arg1, %c0_i32, %c0_i32_0 : i32, i32, i32, i32
  }
  func.func @transform_3(%arg0: i32, %arg1: i32, %arg2: i32) -> (i32, i32, i32, i32) {
    %c0_i32 = arith.constant 0 : i32
    %c0_i32_0 = arith.constant 0 : i32
    %c0_i32_1 = arith.constant 0 : i32
    return %arg0, %arg1, %c0_i32, %c0_i32_0 : i32, i32, i32, i32
  }
  func.func @transform_4(%arg0: i32, %arg1: i32, %arg2: i32) -> (i32, i32, i32, i32) {
    %c0_i32 = arith.constant 0 : i32
    %c0_i32_0 = arith.constant 0 : i32
    %c0_i32_1 = arith.constant 0 : i32
    return %arg0, %arg1, %c0_i32, %c0_i32_0 : i32, i32, i32, i32
  }
}

</mosaic_0001>

<bundles_post_ra>
// kernel: dice_loss.1
= control target key start
LH: loop header
LB: loop body
LE: loop exit
PB: predicated region body
PF: predicated region fallthrough
CT: control target
= control target key end

     0   :  { %s774_s15 = smov 0   ;;  %s776_s16 = smov 0   ;;  %s859_s0 = inlined_call_operand.vmem [shape: f32[2,4,256], index: 0, kind: input, shape index: {}]   ;;  %s860_s1 = inlined_call_operand.vmem [shape: s32[2,1,256], index: 1, kind: input, shape index: {}]   ;;  %s861_s2 = inlined_call_operand.vmem [shape: f32[1,2,4,1], index: 2, kind: output, shape index: {0}]   ;;  %s862_s3 = inlined_call_operand.vmem [shape: f32[1,2,4,1], index: 3, kind: output, shape index: {1}]   ;;  %s863_s4 = inlined_call_operand.vmem [shape: f32[1,2,4,1], index: 4, kind: output, shape index: {2}]  }
   0x1   :  { %s778_s17 = smov 0  }
   0x2 LB: > { %s30_s18 = sadd.s32 1, %s742_s16  ;;  %p683_p0 = scmp.ge.s32.totalorder %s746_s17, 1  ;;  %s746_s17 = sphi %s778_s17, %s15_s17   ;;  %s742_s16 = sphi %s776_s16, %s865_s16   ;;  %s738_s15 = sphi %s774_s15, %s864_s15  }
   0x3   : > { %p32_p1 = scmp.ge.s32.totalorder %s30_s18, 2  ;;  %p239_p2 = scmp.lt.s32.totalorder %s746_s17, 3 }
   0x5   : > { %s867_s18 = smov (%p32_p1, %s30_s18), 0  ;;  %p240_p3 = pnand %p683_p0, %p239_p2 }
   0x6   : > { %p306_p4 = scmp.lt.s32.totalorder (!%p240_p3), %s738_s15, 1 }
   0x7   : > { %243 = sbr.rel (%p240_p3) target bundleno = 234 (0xea), region = 28 }
   0xc   : > { %s869_s15 = smov (!%p306_p4, %s738_s15), 1  ;;  %vm383_vm0 = vcmask 1043456   ;;  %vm361_vm1 = vcmask 3072   ;;  %v748_v45 = vmov 0.0   ;;  %v367_v48 = vlaneseq }
   0xd   : > { %s694_s19 = sshll.u32 %s869_s15, 3  ;;  %s805_s23 = sshll.u32 %s869_s15, 2 }
   0xe   : > { %s313_s22 = scalar_lea.vmem %s859_s0, %s694_s19  ;;  %s811_s26 = scalar_lea.vmem %s861_s2, %s805_s23  ;;  %v368_v53 = vshrl.u32 %v367_v48, 7 }
   0xf   : > { %v365_v0 = vld [vmem:[%s313_s22] sm:$0xff]  ;;  %s686_s27 = sshll.u32 %s869_s15, 1  ;;  %362 = vst.msk [vmem:[%s811_s26] sm:$0xf] %vm361_vm1, %v748_v45  ;;  %s823_s7 = scalar_lea.vmem %s863_s4, %s805_s23 }
  0x10   : > { %378 = vst [vmem:[#allocation1] ss:$2 sm:$0xff] %v365_v0  ;;  %s328_s30 = scalar_lea.vmem %s860_s1, %s686_s27  ;;  %s829_s10 = scalar_lea.vmem %s862_s3, %s805_s23 }
  0x11   : > { %v366_v50 = vld [vmem:[%s328_s30] sm:$0x3]  ;;  %364 = vst.msk [vmem:[%s823_s7] sm:$0xf] %vm361_vm1, %v748_v45 }
  0x12   : > { %v369_v54 = vperm.slane %v366_v50, 0  ;;  %v370_v55 = vperm.slane %v366_v50, 1  ;;  %363 = vst.msk [vmem:[%s829_s10] sm:$0xf] %vm361_vm1, %v748_v45 }
  0x14   : > { %vm371_vm6 = vcmp.eq.s32.totalorder %v368_v53, %v369_v54  ;;  %vm372_vm7 = vcmp.eq.s32.totalorder %v368_v53, %v370_v55 }
  0x15   : > { %v690_v57 = vsel %vm371_vm6, 1.0, %v748_v45  ;;  %v691_v58 = vsel %vm372_vm7, 1.0, %v748_v45 }
  0x17   : > { %v379_v1 = vld.sshfl [vmem:[#allocation1] sm:$0xff pattern:$0x75316420]  ;;  %v380_v2 = vld.sshfl [vmem:[#allocation1 + $0x8] sm:$0xff pattern:$0x75316420] }
  0x18   : > { %v384_v3 = vsel %vm383_vm0, %v379_v1, -inf  ;;  %v391_v4 = vsel %vm383_vm0, %v380_v2, -inf  ;;  %v464_v2 = vsel %vm383_vm0, %v690_v57, 0.0 }
  0x19   : > { %v385_v5 = vrot.slane %v384_v3, 4  ;;  %v392_v6 = vrot.slane %v391_v4, 4 }
  0x1b   : > { %v386_v7 = vmax.f32 %v384_v3, %v385_v5  ;;  %v393_v8 = vmax.f32 %v391_v4, %v392_v6  ;;  %v465_v3 = vsel %vm383_vm0, %v691_v58, 0.0 }
  0x1d   : > { %v387_v9 = vrot.slane %v386_v7, 2  ;;  %v394_v10 = vrot.slane %v393_v8, 2 }
  0x1f   : > { %v388_v11 = vmax.f32 %v386_v7, %v387_v9  ;;  %v395_v12 = vmax.f32 %v393_v8, %v394_v10  ;;  %v466_v9 = vadd.f32 %v465_v3, %v464_v2  ;;  %v446_v10 = vld [vmem:[%s811_s26] sm:$0xf] }
  0x21   : > { %v389_v13 = vrot.slane %v388_v11, 1  ;;  %v396_v14 = vrot.slane %v395_v12, 1 }
  0x23   : > { %v390_v15 = vmax.f32 %v388_v11, %v389_v13  ;;  %v397_v16 = vmax.f32 %v395_v12, %v396_v14  ;;  %v471_v13 = vld [vmem:[%s823_s7] sm:$0xf] }
  0x25   : > { %v400_v17 = vrot.slane %v397_v16, 4 }
  0x27   : > { %v401_v18 = vsel %vm383_vm0, %v390_v15, %v400_v17  ;;  %v463_v15 = vld [vmem:[%s829_s10] sm:$0xf] }
  0x28   : > { %v403_v19 = vsub.f32 %v365_v0, %v401_v18 }
  0x2a   : > { %v404_v20 = vmul.f32 1.442695, %v403_v19 }
  0x2c   : > { %720 = vpow2.f32 %v404_v20 }
  0x32   : > { %v721_v21 = vpop.eup %720 }
  0x33   : > { %407 = vst [vmem:[#allocation1] ss:$2 sm:$0xff] %v721_v21 }
  0x3a   : > { %v408_v22 = vld.sshfl [vmem:[#allocation1] sm:$0xff pattern:$0x75316420]  ;;  %v409_v23 = vld.sshfl [vmem:[#allocation1 + $0x8] sm:$0xff pattern:$0x75316420] }
  0x3b   : > { %v412_v24 = vsel %vm383_vm0, %v408_v22, 0.0  ;;  %v419_v25 = vsel %vm383_vm0, %v409_v23, 0.0 }
  0x3c   : > { %v413_v26 = vrot.slane %v412_v24, 4  ;;  %v420_v27 = vrot.slane %v419_v25, 4 }
  0x3e   : > { %v414_v28 = vadd.f32 %v413_v26, %v412_v24  ;;  %v421_v29 = vadd.f32 %v420_v27, %v419_v25 }
  0x40   : > { %v415_v30 = vrot.slane %v414_v28, 2  ;;  %v422_v31 = vrot.slane %v421_v29, 2 }
  0x42   : > { %v416_v32 = vadd.f32 %v415_v30, %v414_v28  ;;  %v423_v33 = vadd.f32 %v422_v31, %v421_v29 }
  0x44   : > { %v417_v34 = vrot.slane %v416_v32, 1  ;;  %v424_v35 = vrot.slane %v423_v33, 1 }
  0x46   : > { %v418_v36 = vadd.f32 %v417_v34, %v416_v32  ;;  %v425_v37 = vadd.f32 %v424_v35, %v423_v33 }
  0x48   : > { %v428_v38 = vrot.slane %v425_v37, 4 }
  0x4a   : > { %v429_v39 = vsel %vm383_vm0, %v418_v36, %v428_v38 }
  0x4b   : > { %722 = vrcp.f32 %v429_v39  ;;  %v442_v42 = vand.u32 2147483648, %v429_v39  ;;  %vm436_vm2 = vweird.f32 %v429_v39  ;;  %v440_v44 = vand.u32 2147483647, %v429_v39 }
  0x4d   : > { %v443_v47 = vor.u32 1.1754944e-38, %v442_v42  ;;  %vm441_vm5 = vcmp.eq.f32.partialorder %v440_v44, 8.507059e+37 }
  0x51   : > { %v723_v40 = vpop.eup %722 }
  0x52   : > { %v432_v41 = vmul.f32 %v723_v40, %v429_v39  ;;  %vm437_vm3 = vweird.f32 %v723_v40 }
  0x53   : > { %vm438_vm4 = vmor %vm436_vm2, %vm437_vm3 }
  0x54   : > { %v433_v43 = vsub.f32 1.0, %v432_v41 }
  0x56   : > { %v434_v46 = vmul.f32 %v723_v40, %v433_v43 }
  0x58   : > { %v435_v49 = vadd.f32 %v723_v40, %v434_v46 }
  0x5a   : > { %v439_v51 = vsel %vm438_vm4, %v723_v40, %v435_v49 }
  0x5b   : > { %v444_v52 = vsel %vm441_vm5, %v443_v47, %v439_v51 }
  0x5c   : > { %v445_v56 = vmul.f32 %v721_v21, %v444_v52 }
  0x5e   : > { %448 = vst [vmem:[#allocation1] ss:$2 sm:$0xff] %v445_v56 }
  0x65   : > { %v449_v59 = vld.sshfl [vmem:[#allocation1] sm:$0xff pattern:$0x75316420]  ;;  %v450_v60 = vld.sshfl [vmem:[#allocation1 + $0x8] sm:$0xff pattern:$0x75316420] }
  0x66   : > { %v453_v61 = vmul.f32 %v690_v57, %v449_v59  ;;  %v454_v62 = vmul.f32 %v691_v58, %v450_v60  ;;  %472 = vst [vmem:[#allocation1] ss:$2 sm:$0xff] %v445_v56 }
  0x68   : > { %v455_v63 = vsel %vm383_vm0, %v453_v61, 0.0  ;;  %v456_v0 = vsel %vm383_vm0, %v454_v62, 0.0 }
  0x69   : > { %v457_v1 = vadd.f32 %v456_v0, %v455_v63 }
  0x6b   : > { %458 = vadd.xlane.f32.xlu0 %v457_v1 }
  0x6d   : > { %v473_v4 = vld.sshfl [vmem:[#allocation1] sm:$0xff pattern:$0x75316420]  ;;  %v474_v5 = vld.sshfl [vmem:[#allocation1 + $0x8] sm:$0xff pattern:$0x75316420] }
  0x6e   : > { %v477_v6 = vsel %vm383_vm0, %v473_v4, 0.0  ;;  %v478_v7 = vsel %vm383_vm0, %v474_v5, 0.0 }
  0x6f   : > { %v479_v8 = vadd.f32 %v478_v7, %v477_v6 }
  0x71   : > { %480 = vadd.xlane.f32.xlu1 %v479_v8 }
  0x73   : > { %467 = vadd.xlane.f32.xlu0 %v466_v9 }
  0xde   : > { %v459_v11 = vpop.xlane.xlu0 %458 }
  0xdf   : > { %v460_v12 = vadd.f32 %v459_v11, %v446_v10 }
  0xe1   : > { %462 = vst.msk [vmem:[%s811_s26] sm:$0xf] %vm361_vm1, %v460_v12 }
  0xe4   : > { %v481_v14 = vpop.xlane.xlu1 %480 }
  0xe5   : > { %v482_v16 = vadd.f32 %v481_v14, %v471_v13 }
  0xe6   : > { %v468_v17 = vpop.xlane.xlu0 %467 }
  0xe7   : > { %483 = vst.msk [vmem:[%s823_s7] sm:$0xf] %vm361_vm1, %v482_v16  ;;  %v469_v18 = vadd.f32 %v468_v17, %v463_v15 }
  0xe9   : > { %470 = vst.msk [vmem:[%s829_s10] sm:$0xf] %vm361_vm1, %v469_v18 }
  0xea PF: > { %s15_s17 = sadd.s32 1, %s746_s17   ;;  %s864_s15 = smov %s742_s16 }
  0xeb   : > { %p12_p5 = scmp.ge.s32.totalorder %s15_s17, 4   ;;  %s865_s16 = smov %s867_s18 }
  0xed   :  { %14 = sbr.rel (!%p12_p5) target bundleno = 2 (0x2), region = 89 }

</bundles_post_ra>
